<compile_context>
chip_gen: v6e
topology: v6e:2x2x1
jax: 0.10.0
libtpu: 0.0.40
codegen_flags: <defaults>
</compile_context>

<pallas_src>
import functools

import jax
import jax.numpy as jnp
from jax.experimental import pallas as pl
from jax.experimental.pallas import tpu as pltpu


def _round_up(x, m):
    return (x + m - 1) // m * m


def _vmem_limit_bytes():
    """~3/4 of physical VMEM, capped at 96 MiB (v5e/v6e: 96, v7x: 48)."""
    cap = None
    try:
        cap = getattr(pltpu.get_tpu_info(), "vmem_capacity_bytes", None)
    except Exception:
        cap = None
    if not cap:
        cap = 64 * 1024 * 1024
    return int(min(cap * 3 // 4, 96 * 1024 * 1024))


def _residual_kernel(x_ref, w_ref, b_ref, o_ref, *, offsets, lt, span):
    # x_ref: (1, Cp, l_in)  zero-padded image, spatial dims flattened on lanes
    #                       (channels on sublanes, Cp % 8 == 0).
    # w_ref: (Cout, 9*Cp)   im2col weights; 1x1 conv folded into centre tap,
    #                       padded channels carry zero weights.
    # b_ref: (Cout, 1)      folded bias.
    # o_ref: (1, Cout, lt)  lane-dense output tile.
    t = pl.program_id(1)
    base = pl.multiple_of(t * lt, 128)
    # One aligned dynamic load of this tile's lanes + the halo lanes needed by
    # the bottom/right taps.
    xs = x_ref[0, :, pl.ds(base, span)]                       # (Cp, lt + halo)

    # im2col slab: 9 statically-shifted taps stacked along sublanes. Each
    # piece is a whole number of 8-sublane tiles, so the concatenate is pure
    # vreg placement; the shifts are cheap lane relayouts.
    slab = jnp.concatenate([xs[:, s:s + lt] for s in offsets], axis=0)

    # Single MXU matmul, K = 9*Cp. f32 operands on purpose: at tiny Cin the
    # kernel is memory/step-overhead bound, not MXU bound.
    # TODO(synk): cast slab/weights to bf16 (keep f32 accumulation) once Cin
    # is large enough (~64) that the kernel becomes MXU-bound.
    acc = jnp.dot(w_ref[...], slab, preferred_element_type=jnp.float32)
    acc = acc + b_ref[...]                                    # bias over lanes
    o_ref[0] = jnp.maximum(acc, 0.0).astype(o_ref.dtype)


def residual_forward(x_nchw, w3, b3, w1, b1, *, lane_tile=None):
    """relu(conv3x3(x) + conv1x1(x)) with NCHW input/output (stride 1).

    w3: (3,3,Cin,Cout) HWIO, b3: (Cout,), w1: (Cin,Cout), b1: (Cout,).
    """
    N, C, H, W = x_nchw.shape
    Cout = w3.shape[3]
    Hp, Wp = H + 2, W + 2
    flat = H * Wp                              # flat output extent (padded W)

    # ---- lane tile / grid selection --------------------------------------
    if lane_tile is None:
        # Small images: collapse to a single lane tile (fewest serial grid
        # steps). Large images: 512-lane tiles.
        lt = _round_up(flat, 128) if flat <= 2048 else 512
        # Keep >= 2 grid work units so both v7x TensorCores get work.
        if N * pl.cdiv(flat, lt) < 2 and lt > 128:
            lt = _round_up(pl.cdiv(flat, 2), 128)
    else:
        lt = lane_tile
    assert lt % 128 == 0, "lane tile must be a multiple of 128"
    nt = pl.cdiv(flat, lt)
    l_out = nt * lt

    # Halo covers the largest tap offset (2*Wp + 2); keep it lane-aligned.
    halo = _round_up(2 * Wp + 2, 128)
    assert halo >= 2 * Wp + 2
    span = lt + halo

    # ---- fold 1x1 conv and pack weights for one im2col matmul ------------
    Cp = _round_up(C, 8)                       # pad channels to sublane tiles
    w3f = w3.at[1, 1].add(w1)                  # fold 1x1 into centre tap
    wt = jnp.transpose(w3f, (0, 1, 3, 2)).reshape(9, Cout, C)   # tap-major
    wt = jnp.pad(wt, ((0, 0), (0, 0), (0, Cp - C)))
    w2 = jnp.transpose(wt, (1, 0, 2)).reshape(Cout, 9 * Cp)
    bf = (b3 + b1).reshape(Cout, 1)

    # ---- single zero-pad: conv halo + channel pad + flat tail ------------
    need = nt * lt + halo                      # max lane the last tile reads
    extra_rows = pl.cdiv(max(need - Hp * Wp, 0), Wp)
    Hp2 = Hp + extra_rows
    l_in = Hp2 * Wp
    x_flat = jnp.pad(
        x_nchw, ((0, 0), (0, Cp - C), (1, 1 + extra_rows), (1, 1))
    ).reshape(N, Cp, l_in)                     # free, bit-compatible reshape

    offsets = tuple(ky * Wp + kx for ky in range(3) for kx in range(3))
    kernel = functools.partial(_residual_kernel, offsets=offsets, lt=lt,
                               span=span)

    out_flat = pl.pallas_call(
        kernel,
        out_shape=jax.ShapeDtypeStruct((N, Cout, l_out), x_nchw.dtype),
        grid_spec=pltpu.PrefetchScalarGridSpec(
            num_scalar_prefetch=0,
            grid=(N, nt),
            in_specs=[
                # Whole flattened image per batch element, re-sliced per lane
                # tile inside the kernel.
                # TODO(synk): for production-size images (esp. v7x, 64 MiB
                # VMEM/TC) switch to halo'd row tiles via manual DMA
                # (memory_space=pl.ANY + make_async_copy) so the VMEM
                # footprint is independent of the image size.
                pl.BlockSpec((1, Cp, l_in), lambda n, t: (n, 0, 0)),
                pl.BlockSpec((Cout, 9 * Cp), lambda n, t: (0, 0)),
                pl.BlockSpec((Cout, 1), lambda n, t: (0, 0)),
            ],
            out_specs=pl.BlockSpec((1, Cout, lt), lambda n, t: (n, 0, t)),
        ),
        compiler_params=pltpu.CompilerParams(
            dimension_semantics=("parallel", "parallel"),
            vmem_limit_bytes=_vmem_limit_bytes()),
    )(x_flat, w2, bf)

    # Drop the width/flat padding: (N,Co,L) -> (N,Co,H,Wp) -> (N,Co,H,W).
    return out_flat[:, :, : H * Wp].reshape(N, Cout, H, Wp)[:, :, :, :W]


if __name__ == "__main__":
    key = jax.random.PRNGKey(0)
    N, C, H, W = 2, 4, 16, 16

    k_x, k_w3, k_b3, k_w1, k_b1 = jax.random.split(key, 5)
    x = jax.random.normal(k_x, (N, C, H, W), dtype=jnp.float32)
    # HWIO weight layout for the 3x3 conv; (Cin, Cout) for the 1x1 conv.
    w3 = jax.random.normal(k_w3, (3, 3, C, C), dtype=jnp.float32) * 0.1
    b3 = jax.random.normal(k_b3, (C,), dtype=jnp.float32) * 0.1
    w1 = jax.random.normal(k_w1, (C, C), dtype=jnp.float32) * 0.1
    b1 = jax.random.normal(k_b1, (C,), dtype=jnp.float32) * 0.1

    out = residual_forward(x, w3, b3, w1, b1)
    jax.block_until_ready(out)

    # Correctness check against plain-JAX relu(conv3x3 + conv1x1).
    x_nhwc = jnp.transpose(x, (0, 2, 3, 1))
    conv3 = jax.lax.conv_general_dilated(
        x_nhwc, w3, (1, 1), "SAME",
        dimension_numbers=("NHWC", "HWIO", "NHWC")) + b3
    conv1 = jax.lax.conv_general_dilated(
        x_nhwc, w1.reshape(1, 1, C, C), (1, 1), "SAME",
        dimension_numbers=("NHWC", "HWIO", "NHWC")) + b1
    ref = jnp.transpose(jnp.maximum(conv3 + conv1, 0.0), (0, 3, 1, 2))
    assert jnp.allclose(out, ref, atol=1e-4, rtol=1e-4), "mismatch vs reference"

    print("KERNEL_OK")
</pallas_src>

<mosaic_0001>
module attributes {stable_mosaic.version = 11 : i64} {
  func.func @_residual_kernel(%arg0: i32, %arg1: i32, %arg2: memref<1x8x522xf32, #tpu.memory_space<vmem>>, %arg3: memref<4x72xf32, #tpu.memory_space<vmem>>, %arg4: memref<4x1xf32, #tpu.memory_space<vmem>>, %arg5: memref<1x4x384xf32, #tpu.memory_space<vmem>>) attributes {dimension_semantics = [#tpu.dimension_semantics<parallel>, #tpu.dimension_semantics<parallel>], iteration_bounds = array<i64: 2, 1>, scalar_prefetch = 0 : i64, scratch_operands = 0 : i64, tpu.core_type = #tpu.core_type<tc>, window_params = [{transform_indices = @transform_0, window_bounds = array<i64: 1, 8, 522>}, {pipeline_mode = #tpu.pipeline_mode<synchronous>, transform_indices = @transform_1, window_bounds = array<i64: 4, 72>}, {pipeline_mode = #tpu.pipeline_mode<synchronous>, transform_indices = @transform_2, window_bounds = array<i64: 4, 1>}, {transform_indices = @transform_3, window_bounds = array<i64: 1, 4, 384>}]} {
    %c384_i32 = arith.constant 384 : i32
    %0 = arith.muli %arg1, %c384_i32 : i32
    %1 = tpu.assume_multiple %0, 128 : i32
    %c0 = arith.constant 0 : index
    %c0_0 = arith.constant 0 : index
    %2 = arith.index_cast %1 : i32 to index
    %3 = vector.load %arg2[%c0, %c0_0, %2] : memref<1x8x522xf32, #tpu.memory_space<vmem>>, vector<1x8x512xf32>
    %4 = vector.shape_cast %3 : vector<1x8x512xf32> to vector<8x512xf32>
    %5 = vector.extract_strided_slice %4 {offsets = [0, 0], sizes = [8, 384], strides = [1, 1]} : vector<8x512xf32> to vector<8x384xf32>
    %6 = vector.extract_strided_slice %4 {offsets = [0, 1], sizes = [8, 384], strides = [1, 1]} : vector<8x512xf32> to vector<8x384xf32>
    %7 = vector.extract_strided_slice %4 {offsets = [0, 2], sizes = [8, 384], strides = [1, 1]} : vector<8x512xf32> to vector<8x384xf32>
    %8 = vector.extract_strided_slice %4 {offsets = [0, 18], sizes = [8, 384], strides = [1, 1]} : vector<8x512xf32> to vector<8x384xf32>
    %9 = vector.extract_strided_slice %4 {offsets = [0, 19], sizes = [8, 384], strides = [1, 1]} : vector<8x512xf32> to vector<8x384xf32>
    %10 = vector.extract_strided_slice %4 {offsets = [0, 20], sizes = [8, 384], strides = [1, 1]} : vector<8x512xf32> to vector<8x384xf32>
    %11 = vector.extract_strided_slice %4 {offsets = [0, 36], sizes = [8, 384], strides = [1, 1]} : vector<8x512xf32> to vector<8x384xf32>
    %12 = vector.extract_strided_slice %4 {offsets = [0, 37], sizes = [8, 384], strides = [1, 1]} : vector<8x512xf32> to vector<8x384xf32>
    %13 = vector.extract_strided_slice %4 {offsets = [0, 38], sizes = [8, 384], strides = [1, 1]} : vector<8x512xf32> to vector<8x384xf32>
    %14 = tpu.concatenate %5, %6, %7, %8, %9, %10, %11, %12, %13 in 0 : vector<8x384xf32>, vector<8x384xf32>, vector<8x384xf32>, vector<8x384xf32>, vector<8x384xf32>, vector<8x384xf32>, vector<8x384xf32>, vector<8x384xf32>, vector<8x384xf32> -> vector<72x384xf32>
    %c0_1 = arith.constant 0 : index
    %c0_2 = arith.constant 0 : index
    %15 = vector.load %arg3[%c0_1, %c0_2] : memref<4x72xf32, #tpu.memory_space<vmem>>, vector<4x72xf32>
    %cst = arith.constant dense<0.000000e+00> : vector<4x384xf32>
    %16 = tpu.matmul %15, %14, %cst {dimension_numbers = #tpu.dot_dimension_numbers<[1], [0], [0], [1], [0, 0, 1, 1], [], []>} : vector<4x72xf32>, vector<72x384xf32>, vector<4x384xf32> -> vector<4x384xf32>
    %c0_3 = arith.constant 0 : index
    %c0_4 = arith.constant 0 : index
    %17 = vector.load %arg4[%c0_3, %c0_4] : memref<4x1xf32, #tpu.memory_space<vmem>>, vector<4x1xf32>
    %18 = vector.broadcast %17 : vector<4x1xf32> to vector<4x384xf32>
    %19 = arith.addf %16, %18 : vector<4x384xf32>
    %cst_5 = arith.constant 0.000000e+00 : f32
    %20 = vector.broadcast %cst_5 : f32 to vector<4x384xf32>
    %21 = arith.maximumf %19, %20 : vector<4x384xf32>
    %c0_6 = arith.constant 0 : index
    %c0_7 = arith.constant 0 : index
    %c0_8 = arith.constant 0 : index
    %22 = vector.load %arg5[%c0_6, %c0_7, %c0_8] : memref<1x4x384xf32, #tpu.memory_space<vmem>>, vector<1x4x384xf32>
    %23 = vector.shape_cast %22 : vector<1x4x384xf32> to vector<4x384xf32>
    %24 = vector.shape_cast %21 : vector<4x384xf32> to vector<1x4x384xf32>
    tpu.vector_store %arg5[%c0_6, %c0_7, %c0_8], %24 {strides = array<i32>} : memref<1x4x384xf32, #tpu.memory_space<vmem>>, vector<1x4x384xf32>,
    return
  }
  func.func @transform_0(%arg0: i32, %arg1: i32) -> (i32, i32, i32) {
    %c0_i32 = arith.constant 0 : i32
    %c0_i32_0 = arith.constant 0 : i32
    %c0_i32_1 = arith.constant 0 : i32
    return %arg0, %c0_i32, %c0_i32_0 : i32, i32, i32
  }
  func.func @transform_1(%arg0: i32, %arg1: i32) -> (i32, i32) {
    %c0_i32 = arith.constant 0 : i32
    %c0_i32_0 = arith.constant 0 : i32
    %c0_i32_1 = arith.constant 0 : i32
    return %c0_i32, %c0_i32_0 : i32, i32
  }
  func.func @transform_2(%arg0: i32, %arg1: i32) -> (i32, i32) {
    %c0_i32 = arith.constant 0 : i32
    %c0_i32_0 = arith.constant 0 : i32
    %c0_i32_1 = arith.constant 0 : i32
    return %c0_i32, %c0_i32_0 : i32, i32
  }
  func.func @transform_3(%arg0: i32, %arg1: i32) -> (i32, i32, i32) {
    %c0_i32 = arith.constant 0 : i32
    %c0_i32_0 = arith.constant 0 : i32
    return %arg0, %c0_i32, %arg1 : i32, i32, i32
  }
}

</mosaic_0001>

<bundles_post_ra>
// kernel: tpu_custom_call.1
= control target key start
LH: loop header
LB: loop body
LE: loop exit
PB: predicated region body
PF: predicated region fallthrough
CT: control target
= control target key end

     0   :  { %8 = vsyncpa [#allocation3], 0  ;;  %s1067_s0 = inlined_call_operand.hbm [shape: f32[2,8,522], index: 0, kind: input, shape index: {}]   ;;  %s1068_s1 = inlined_call_operand.vmem [shape: f32[4,72], index: 1, kind: input, shape index: {}]   ;;  %s1069_s2 = inlined_call_operand.vmem [shape: f32[4,1], index: 2, kind: input, shape index: {}]   ;;  %s1070_s3 = inlined_call_operand.hbm [shape: f32[2,4,384], index: 3, kind: output, shape index: {}]  }
   0x1   :  { %10 = vsyncpa [#allocation3 + $0x1], 0 }
   0x2   :  { %11 = vsyncpa [#allocation4], 0 }
   0x3   :  { %13 = vsyncpa [#allocation4 + $0x1], 0  ;;  %s860_s12 = smov 0   ;;  %s862_s13 = smov 0  }
   0x4   :  { %s864_s14 = smov 0   ;;  %s866_s15 = smov 0  }
   0x5   :  { %s868_s16 = smov 0   ;;  %s870_s17 = smov 0  }
   0x6 LB: > { %s596_s18 = sadd.s32 4294967295, %s825_s17   ;;  %s597_s19 = sadd.s32 4294967294, %s825_s17   ;;  %s825_s17 = sphi %s870_s17, %s19_s17   ;;  %s821_s16 = sphi %s868_s16, %s1082_s16   ;;  %s817_s15 = sphi %s866_s15, %s1081_s15   ;;  %s813_s14 = sphi %s864_s14, %s1080_s14   ;;  %s809_s13 = sphi %s862_s13, %s1079_s13   ;;  %s805_s12 = sphi %s860_s12, %s1078_s12  }
   0x7   : > { %s31_s20 = sadd.s32 1, %s821_s16  ;;  %s38_s21 = sadd.s32 1, %s813_s14 }
   0x8   : > { %p33_p0 = scmp.ge.s32.totalorder %s31_s20, 2  ;;  %p45_p1 = scmp.ne.s32.totalorder %s813_s14, %s809_s13 }
   0x9   : > { %p46_p2 = scmp.eq.s32.totalorder %s825_s17, 0  ;;  %p51_p3 = scmp.ne.s32.totalorder %s809_s13, %s805_s12 }
   0xa   : > { %s1084_s20 = smov (%p33_p0, %s31_s20), 0  ;;  %p52_p5 = scmp.eq.s32.totalorder %s596_s18, 0 }
   0xb   : > { %p901_p4 = por %p46_p2, %p45_p1  ;;  %s35_s23 = ssub.s32 %s821_s16, %s1084_s20 }
   0xc   : > { %p119_p6 = scmp.eq.s32.totalorder %s596_s18, 1  ;;  %p36_p7 = scmp.eq.s32.totalorder %s35_s23, 0 }
   0xd   : > { %p907_p8 = por %p52_p5, %p51_p3  ;;  %p125_p10 = scmp.eq.s32.totalorder %s597_s19, 1 }
   0xe   : > { %p911_p9 = por %p119_p6, %p45_p1  ;;  %p655_p13 = scmp.lt.s32.totalorder %s825_s17, 2 }
   0xf   : > { %s916_s26 = scalar_select %p36_p7, %s813_s14, %s38_s21  }
  0x10   : > { %p918_p11 = por %p125_p10, %p51_p3  ;;  %s151_s28 = sand.u32 1, %s813_s14  }
  0x11   : > { %s638_s29 = smul.u32 40, %s151_s28  ;;  %p928_p0 = pnand %p655_p13, %p901_p4 }
  0x12   : > { %s1074_s27 = scalar_select %p918_p11, 1, 0 }
  0x13   : > { %s639_s30 = smul.u32 640, %s821_s16  ;;  %p601_p1 = scmp.ge.s32.totalorder %s825_s17, 1 }
  0x14   : > { %s155_s8 = scalar_lea.vmem [#allocation2], %s638_s29  ;;  %s152_s10 = scalar_lea.sflag [#allocation3], %s151_s28 }
  0x15   : > { %s161_s7 = scalar_lea.hbm %s1067_s0, %s639_s30  ;;  %s163_s9 = sshll.u32 %s155_s8, 4  ;;  %s164_s9 = int_to_ptr.vmem [resolvable:$true] %s163_s9 }
  0x16   : > { %p719_p2 = pneg %p928_p0  ;;  %s730_s11 = scalar_lea.vmem %s164_s9, 640 }
  0x17   : > { %p731_p3 = scmp.ne.s32.totalorder %s164_s9, %s730_s11  ;;  %s827_s18 = smov [#allocation2]  }
  0x18   : > { %s735_s19 = sshll.u32 %s827_s18, 4  ;;  %s736_s19 = int_to_ptr.vmem [resolvable:$false] %s735_s19 }
  0x19   : > { %p733_p5 = pnand %p731_p3, %p719_p2  ;;  %s737_s21 = scalar_lea.vmem %s736_s19, 1280 }
  0x1a   : > { %p738_p4 = scmp.lt.s32.totalorder %s164_s9, %s736_s19  ;;  %p739_p7 = scmp.lt.s32.totalorder %s737_s21, %s730_s11 }
  0x1b   : > { %p734_p6 = pneg %p733_p5 }
  0x1c   : > { %p740_p10 = por %p739_p7, %p738_p4 }
  0x1e   : > { %p741_p13 = pnand %p740_p10, %p734_p6 }
  0x20   : > { %744 = shalt.err (!%p741_p13)
}
  0x21   : > { %650 = dma.hbm_to_vmem [thread:$0]  (!%p928_p0), %s161_s7, 640, %s164_s9, %s152_s10  }
  0x22   : > { %p168_p12 = scmp.lt.s32.totalorder %s825_s17, 3 }
  0x24   : > { %p169_p11 = pnand %p601_p1, %p168_p12 }
  0x25   : > { %s944_s22 = sand.u32 (!%p169_p11), 1, %s809_s13  }
  0x26   : > { %172 = sbr.rel (%p169_p11) target bundleno = 436 (0x1b4), region = 32  ;;  %s175_s28 = scalar_lea.sflag (!%p169_p11), [#allocation3], %s944_s22 }
  0x27   : > { %s640_s23 = smul.u32 (!%p169_p11), 40, %s944_s22 }
  0x29   : > { %s178_s29 = scalar_lea.vmem (!%p169_p11), [#allocation2], %s640_s23 }
  0x2b   : > { %796 = dma.done.wait (%p907_p8), %s175_s28, 640  }
  0x2c   : > { %798 = vsyncadd (%p907_p8), %s175_s28, 4294966656  ;;  %v952_v0 = vld [vmem:[%s178_s29 + $0x8] sm:$0xff]  ;;  %v954_v1 = vld [vmem:[%s178_s29] sm:$0xff]  ;;  %s828_s30 = smov 90   ;;  %v829_v3 = vmov 0.0   ;;  %s830_s24 = smov 91  }
  0x2d   : > { %322 = vrot.lane.b32.xlu0 %v952_v0, %s828_s30  ;;  %320 = vrot.lane.b32.xlu1 %v954_v1, %s828_s30  ;;  %v958_v2 = vld [vmem:[%s178_s29 + $0x10] sm:$0xff]  ;;  %s831_s4 = smov 92   ;;  %v210_v4 = vld [vmem:[%s178_s29 + $0x18] sm:$0xff]  ;;  %s832_s5 = smov 108   ;;  %vm837_vm0 = vmmov 0   ;;  %v838_v5 = vmov 0  }
  0x2e   : > { %617 = vmatprep.subr.mxu1 %v829_v3  ;;  %410 = vmatprep.mubr.f32.mxu0 %v829_v3  ;;  %s833_s6 = smov 109   ;;  %s834_s7 = smov 110   ;;  %v336_v6 = vld [vmem:[%s1069_s2] sm:$0xf]  ;;  %vm328_vm1 = vcmask 736256   ;;  %vm313_vm2 = vcmask 744448  }
  0x2f   : > { %s835_s8 = smov 126   ;;  %s836_s9 = smov 127   ;;  %635 = vmatprep.mubr.msk.f32.mxu1 %vm837_vm0, %v829_v3  ;;  %716 = vset.pattern.permute.xlu0 %v838_v5  ;;  %vm298_vm3 = vcmask 752640   ;;  %vm283_vm4 = vcmask 883712   ;;  %vm268_vm5 = vcmask 891904   ;;  %vm253_vm6 = vcmask 900096  }
  0x30   : > { %vm238_vm7 = vcmask 1031168   ;;  %vm223_vm8 = vcmask 1039360   ;;  %v335_v59 = vld [vmem:[%s1068_s1] sm:$0xf]  ;;  %vm342_vm9 = vcmask 588800   ;;  %s641_s21 = smul.u32 12, %s944_s22 }
  0x31   : > { %324 = vrot.lane.b32.xlu0 %v958_v2, %s828_s30  ;;  %307 = vrot.lane.b32.xlu1 %v952_v0, %s830_s24  ;;  %s642_s23 = smul.u32 192, %s817_s15  ;;  %s839_s15 = smov [#allocation5]  }
  0x32   : > { %s200_s28 = scalar_lea.vmem [#allocation5], %s641_s21 }
  0x33   : > { %s513_s29 = sshll.u32 %s200_s28, 4  ;;  %s514_s29 = int_to_ptr.vmem [resolvable:$true] %s513_s29 }
  0x35   : > { %309 = vrot.lane.b32.xlu0 %v958_v2, %s830_s24  ;;  %305 = vrot.lane.b32.xlu1 %v954_v1, %s830_s24 }
  0x39   : > { %292 = vrot.lane.b32.xlu0 %v952_v0, %s831_s4  ;;  %294 = vrot.lane.b32.xlu1 %v958_v2, %s831_s4 }
  0x3d   : > { %290 = vrot.lane.b32.xlu0 %v954_v1, %s831_s4  ;;  %326 = vrot.lane.b32.xlu1 %v210_v4, %s828_s30 }
  0x41   : > { %277 = vrot.lane.b32.xlu0 %v952_v0, %s832_s5  ;;  %279 = vrot.lane.b32.xlu1 %v958_v2, %s832_s5 }
  0x45   : > { %275 = vrot.lane.b32.xlu0 %v954_v1, %s832_s5  ;;  %311 = vrot.lane.b32.xlu1 %v210_v4, %s830_s24 }
  0x49   : > { %262 = vrot.lane.b32.xlu0 %v952_v0, %s833_s6  ;;  %264 = vrot.lane.b32.xlu1 %v958_v2, %s833_s6 }
  0x4d   : > { %260 = vrot.lane.b32.xlu0 %v954_v1, %s833_s6  ;;  %296 = vrot.lane.b32.xlu1 %v210_v4, %s831_s4  ;;  %s511_s4 = scalar_lea.hbm %s1070_s3, %s642_s23 }
  0x51   : > { %247 = vrot.lane.b32.xlu0 %v952_v0, %s834_s7  ;;  %249 = vrot.lane.b32.xlu1 %v958_v2, %s834_s7 }
  0x55   : > { %245 = vrot.lane.b32.xlu0 %v954_v1, %s834_s7  ;;  %281 = vrot.lane.b32.xlu1 %v210_v4, %s832_s5  ;;  %s497_s5 = scalar_lea.sflag [#allocation4], %s944_s22 }
  0x59   : > { %232 = vrot.lane.b32.xlu0 %v952_v0, %s835_s8  ;;  %234 = vrot.lane.b32.xlu1 %v958_v2, %s835_s8 }
  0x5d   : > { %230 = vrot.lane.b32.xlu0 %v954_v1, %s835_s8  ;;  %266 = vrot.lane.b32.xlu1 %v210_v4, %s833_s6  ;;  %s745_s6 = scalar_lea.vmem %s514_s29, 192 }
  0x5e   : > { %p746_p8 = scmp.ne.s32.totalorder %s514_s29, %s745_s6 }
  0x60   : > { %p747_p11 = pnand %p746_p8, %p911_p9 }
  0x61   : > { %217 = vrot.lane.b32.xlu0 %v952_v0, %s836_s9  ;;  %219 = vrot.lane.b32.xlu1 %v958_v2, %s836_s9 }
  0x62   : > { %p748_p12 = pneg %p747_p11 }
  0x65   : > { %215 = vrot.lane.b32.xlu0 %v954_v1, %s836_s9  ;;  %251 = vrot.lane.b32.xlu1 %v210_v4, %s834_s7  ;;  %s749_s7 = sshll.u32 %s839_s15, 4  ;;  %s750_s7 = int_to_ptr.vmem [resolvable:$false] %s749_s7 }
  0x66   : > { %p752_p0 = scmp.lt.s32.totalorder %s514_s29, %s750_s7 }
  0x69   : > { %236 = vrot.lane.b32.xlu0 %v210_v4, %s835_s8  ;;  %221 = vrot.lane.b32.xlu1 %v210_v4, %s836_s9  ;;  %s751_s8 = scalar_lea.vmem %s750_s7, 384 }
  0x6a   : > { %p753_p1 = scmp.lt.s32.totalorder %s751_s8, %s745_s6 }
  0x6c   : > { %p754_p2 = por %p753_p1, %p752_p0 }
  0x6d   : > { %339 = vperm.xlu0 %716, %v336_v6  }
  0x6e   : > { %p755_p3 = pnand %p754_p2, %p748_p12 }
  0x9f   : > { %v323_v7 = vpop.permute.xlu0 %322  ;;  %v321_v8 = vpop.permute.xlu1 %320 }
  0xa0   : > { %v329_v12 = vsel %vm328_vm1, %v321_v8, %v323_v7 }
  0xa3   : > { %v325_v9 = vpop.permute.xlu0 %324  ;;  %v308_v10 = vpop.permute.xlu1 %307 }
  0xa4   : > { %v330_v11 = vsel %vm328_vm1, %v323_v7, %v325_v9 }
  0xa5   : > { %360 = vmatprep.subr.mxu0 %v330_v11 }
  0xa6   : > { %361 = vmatpush1.msra.mxu0 %v329_v12 }
  0xa7   : > { %v310_v13 = vpop.permute.xlu0 %309  ;;  %v306_v14 = vpop.permute.xlu1 %305 }
  0xa8   : > { %v315_v15 = vsel %vm313_vm2, %v308_v10, %v310_v13  ;;  %v314_v16 = vsel %vm313_vm2, %v306_v14, %v308_v10 }
  0xa9   : > { %362 = vmatprep.subr.mxu0 %v315_v15 }
  0xaa   : > { %363 = vmatpush1.msra.mxu0 %v314_v16 }
  0xab   : > { %v293_v17 = vpop.permute.xlu0 %292  ;;  %v295_v18 = vpop.permute.xlu1 %294 }
  0xac   : > { %v300_v19 = vsel %vm298_vm3, %v293_v17, %v295_v18 }
  0xad   : > { %364 = vmatprep.subr.mxu0 %v300_v19 }
  0xaf   : > { %v291_v20 = vpop.permute.xlu0 %290  ;;  %v327_v21 = vpop.permute.xlu1 %326 }
  0xb0   : > { %v299_v22 = vsel %vm298_vm3, %v291_v20, %v293_v17  ;;  %v331_v23 = vsel %vm328_vm1, %v325_v9, %v327_v21 }
  0xb1   : > { %365 = vmatpush1.msra.mxu0 %v299_v22  ;;  %618 = vmatpush3.msra.mxu1 %v331_v23 }
  0xb2   : > { %619 = vmatprep.subr.mxu1 %v829_v3 }
  0xb3   : > { %v278_v24 = vpop.permute.xlu0 %277  ;;  %v280_v25 = vpop.permute.xlu1 %279 }
  0xb4   : > { %v285_v26 = vsel %vm283_vm4, %v278_v24, %v280_v25 }
  0xb5   : > { %366 = vmatprep.subr.mxu0 %v285_v26 }
  0xb7   : > { %v276_v27 = vpop.permute.xlu0 %275  ;;  %v312_v28 = vpop.permute.xlu1 %311 }
  0xb8   : > { %v284_v29 = vsel %vm283_vm4, %v276_v27, %v278_v24  ;;  %v316_v30 = vsel %vm313_vm2, %v310_v13, %v312_v28 }
  0xb9   : > { %367 = vmatpush1.msra.mxu0 %v284_v29  ;;  %620 = vmatpush3.msra.mxu1 %v316_v30 }
  0xba   : > { %621 = vmatprep.subr.mxu1 %v829_v3 }
  0xbb   : > { %v263_v31 = vpop.permute.xlu0 %262  ;;  %v265_v32 = vpop.permute.xlu1 %264 }
  0xbc   : > { %v270_v33 = vsel %vm268_vm5, %v263_v31, %v265_v32 }
  0xbd   : > { %368 = vmatprep.subr.mxu0 %v270_v33 }
  0xbf   : > { %v261_v34 = vpop.permute.xlu0 %260  ;;  %v297_v35 = vpop.permute.xlu1 %296 }
  0xc0   : > { %v269_v36 = vsel %vm268_vm5, %v261_v34, %v263_v31  ;;  %v301_v37 = vsel %vm298_vm3, %v295_v18, %v297_v35 }
  0xc1   : > { %369 = vmatpush1.msra.mxu0 %v269_v36  ;;  %622 = vmatpush3.msra.mxu1 %v301_v37 }
  0xc2   : > { %623 = vmatprep.subr.mxu1 %v829_v3 }
  0xc3   : > { %v248_v38 = vpop.permute.xlu0 %247  ;;  %v250_v39 = vpop.permute.xlu1 %249 }
  0xc4   : > { %v255_v40 = vsel %vm253_vm6, %v248_v38, %v250_v39 }
  0xc5   : > { %370 = vmatprep.subr.mxu0 %v255_v40 }
  0xc7   : > { %v246_v41 = vpop.permute.xlu0 %245  ;;  %v282_v42 = vpop.permute.xlu1 %281 }
  0xc8   : > { %v254_v43 = vsel %vm253_vm6, %v246_v41, %v248_v38  ;;  %v286_v44 = vsel %vm283_vm4, %v280_v25, %v282_v42 }
  0xc9   : > { %371 = vmatpush1.msra.mxu0 %v254_v43  ;;  %624 = vmatpush3.msra.mxu1 %v286_v44 }
  0xca   : > { %625 = vmatprep.subr.mxu1 %v829_v3 }
  0xcb   : > { %v233_v45 = vpop.permute.xlu0 %232  ;;  %v235_v46 = vpop.permute.xlu1 %234 }
  0xcc   : > { %v240_v47 = vsel %vm238_vm7, %v233_v45, %v235_v46 }
  0xcd   : > { %372 = vmatprep.subr.mxu0 %v240_v47 }
  0xcf   : > { %v231_v48 = vpop.permute.xlu0 %230  ;;  %v267_v49 = vpop.permute.xlu1 %266 }
  0xd0   : > { %v239_v50 = vsel %vm238_vm7, %v231_v48, %v233_v45  ;;  %v271_v51 = vsel %vm268_vm5, %v265_v32, %v267_v49 }
  0xd1   : > { %373 = vmatpush1.msra.mxu0 %v239_v50  ;;  %626 = vmatpush3.msra.mxu1 %v271_v51 }
  0xd2   : > { %627 = vmatprep.subr.mxu1 %v829_v3 }
  0xd3   : > { %v218_v52 = vpop.permute.xlu0 %217  ;;  %v220_v53 = vpop.permute.xlu1 %219 }
  0xd4   : > { %v225_v54 = vsel %vm223_vm8, %v218_v52, %v220_v53 }
  0xd5   : > { %374 = vmatprep.subr.mxu0 %v225_v54 }
  0xd7   : > { %v216_v55 = vpop.permute.xlu0 %215  ;;  %v252_v56 = vpop.permute.xlu1 %251 }
  0xd8   : > { %v224_v57 = vsel %vm223_vm8, %v216_v55, %v218_v52  ;;  %v256_v58 = vsel %vm253_vm6, %v250_v39, %v252_v56 }
  0xd9   : > { %375 = vmatpush1.msra.mxu0 %v224_v57  ;;  %628 = vmatpush3.msra.mxu1 %v256_v58 }
  0xda   : > { %376 = vmatprep.subr.mxu0 %v952_v0  ;;  %629 = vmatprep.subr.mxu1 %v829_v3 }
  0xdb   : > { %v237_v60 = vpop.permute.xlu0 %236  ;;  %377 = vmatpush1.msra.mxu0 %v954_v1  ;;  %v222_v61 = vpop.permute.xlu1 %221 }
  0xdc   : > { %602 = vmatmul.mubr.msk.f32.vlgmr.msra.gmra.mxu0 %vm342_vm9, %v335_v59  ;;  %v241_v62 = vsel %vm238_vm7, %v235_v46, %v237_v60  ;;  %v226_v63 = vsel %vm223_vm8, %v220_v53, %v222_v61 }
  0xdd   : > { %630 = vmatpush3.msra.mxu1 %v241_v62 }
  0xde   : > { %631 = vmatprep.subr.mxu1 %v829_v3 }
  0xdf   : > { %632 = vmatpush3.msra.mxu1 %v226_v63 }
  0xe0   : > { %633 = vmatprep.subr.mxu1 %v829_v3 }
  0xe1   : > { %634 = vmatpush3.msra.mxu1 %v958_v2 }
  0xe2   : > { %636 = vmatmul.mubr.msk.f32.vlgmr.msra.gmra.mxu1 %vm342_vm9, %v335_v59 }
  0xe8   : > { %v340_v0 = vpop.permute.xlu0 %339 }
 0x19c   : > { %v412_v4 = vpop.f32.mrf.mxu0 }
 0x19d   : > { %v413_v1 = vadd.f32 %v412_v4, %v340_v0 }
 0x19e   : > { %v414_v5 = vpop.f32.mrf.mxu0 }
 0x19f   : > { %v487_v6 = vmax.f32 %v413_v1, 0.0  ;;  %v415_v7 = vadd.f32 %v414_v5, %v340_v0 }
 0x1a1   : > { %v488_v8 = vmax.f32 %v415_v7, 0.0 }
 0x1a2   : > { %v483_v9 = vpop.f32.mrf.mxu1 }
 0x1a3   : > { %v492_v10 = vcombine.low %v487_v6, %v488_v8  ;;  %v484_v11 = vadd.f32 %v483_v9, %v340_v0 }
 0x1a4   : > { %v637_v3 = vpop.f32.mrf.mxu1 }
 0x1a5   : > { %494 = vst [vmem:[%s200_s28] sm:$0xff] %v492_v10  ;;  %v489_v2 = vmax.f32 %v484_v11, 0.0 }
 0x1a7   : > { %495 = vst [vmem:[%s200_s28 + $0x8] sm:$0xf] %v489_v2 }
 0x1a8   : > { %758 = shalt.err (!%p755_p3)
}
 0x1a9   : > { %s759_s9 = scalar_lea.hbm %s511_s4, 192  ;;  %s763_s11 = scalar_lea.hbm %s1070_s3, 384 }
 0x1aa   : > { %p760_p5 = scmp.ne.s32.totalorder %s511_s4, %s759_s9  ;;  %p764_p7 = scmp.lt.s32.totalorder %s511_s4, %s1070_s3 }
 0x1ab   : > { %p765_p10 = scmp.lt.s32.totalorder %s763_s11, %s759_s9 }
 0x1ac   : > { %p761_p6 = pnand %p760_p5, %p911_p9 }
 0x1ad   : > { %p766_p13 = por %p765_p10, %p764_p7 }
 0x1ae   : > { %p762_p4 = pneg %p761_p6 }
 0x1b0   : > { %p767_p8 = pnand %p766_p13, %p762_p4 }
 0x1b2   : > { %770 = shalt.err (!%p767_p8)
}
 0x1b3   : > { %645 = dma.vmem_to_hbm [thread:$0]  (%p911_p9), %s514_s29, 192, %s511_s4, %s497_s5  }
 0x1b4 PF: > { %s525_s21 = sand.u32 1, %s805_s12   ;;  %p1076_p11 = scmp.ne.s32.totalorder %s1074_s27, 0 }
 0x1b5   : > { %p1077_p12 = scmp.ge.s32.totalorder %s825_s17, 2  ;;  %s526_s23 = scalar_lea.sflag [#allocation4], %s525_s21 }
 0x1b7   : > { %p652_p0 = pnand %p1077_p12, %p1076_p11 }
 0x1b9   : > { %p653_p1 = pneg %p652_p0 }
 0x1bb   : > { %800 = dma.done.wait (%p653_p1), %s526_s23, 192  }
 0x1bc   : > { %802 = vsyncadd (%p653_p1), %s526_s23, 4294967104  ;;  %s19_s17 = sadd.s32 1, %s825_s17   ;;  %s1078_s12 = smov %s809_s13 }
 0x1bd   : > { %p16_p2 = scmp.ge.s32.totalorder %s19_s17, 4   ;;  %s1079_s13 = smov %s813_s14 }
 0x1be   : > { %s1080_s14 = smov %s916_s26  ;;  %s1081_s15 = smov %s821_s16 }
 0x1bf   : > { %s1082_s16 = smov %s1084_s20  ;;  %18 = sbr.rel (!%p16_p2) target bundleno = 6 (0x6), region = 78 }
 0x1c4   :  { %531 = vsyncpa [#allocation3], 1 }
 0x1c5   :  { %533 = vsyncpa [#allocation3 + $0x1], 1 }
 0x1c6   :  { %534 = vsyncpa [#allocation4], 1 }
 0x1c7   :  { %536 = vsyncpa [#allocation4 + $0x1], 1 }

</bundles_post_ra>
